<compile_context>
chip_gen: v7x
topology: tpu7x:2x2x1
jax: 0.10.0
libtpu: 0.0.40
codegen_flags: <defaults>
</compile_context>

<pallas_src>
import jax
import jax.numpy as jnp
from jax import lax
from jax.experimental import pallas as pl
from jax.experimental.pallas import tpu as pltpu


def _silu(x):
    return x * jax.nn.sigmoid(x)


def _round_up(x, m):
    return ((x + m - 1) // m) * m


def glo_mlp_kernel(glo_ref, xt_ref,
                   w1_ref, b1_ref, w2_ref, b2_ref, w3_ref, b3_ref,
                   w4a_ref, b4a_ref, w4b_ref, b4b_ref,
                   ot_ref):
    bf16, f32 = jnp.bfloat16, jnp.float32

    # MLP trunk: bf16 operands, f32 accumulation, f32 activation math.
    h = glo_ref[...].astype(bf16)                                         # (BM, D_in)
    h = _silu(jnp.dot(h, w1_ref[...], preferred_element_type=f32) + b1_ref[...])
    h = _silu(jnp.dot(h.astype(bf16), w2_ref[...], preferred_element_type=f32) + b2_ref[...])
    h = _silu(jnp.dot(h.astype(bf16), w3_ref[...], preferred_element_type=f32) + b3_ref[...])
    h = h.astype(bf16)                                                    # (BM, 128)

    # Final layer computed transposed so the (big) row count lands on lanes:
    #   a^T = W4a(out,in) @ h^T   via contraction on the feature dim of both.
    trans_b = (((1,), (1,)), ((), ()))
    a_t = lax.dot_general(w4a_ref[...], h, trans_b,
                          preferred_element_type=f32) + b4a_ref[...]      # (half, BM)
    b_t = lax.dot_general(w4b_ref[...], h, trans_b,
                          preferred_element_type=f32) + b4b_ref[...]      # (half, BM)

    # torch.clip(a, max=3) == minimum(a, 3)
    ot_ref[...] = xt_ref[...] * jnp.exp(jnp.minimum(a_t, 3.0)) + b_t


def glo_mlp_forward(glo_latent, input_x, params, *, block_rows=1024):
    """params = (w1, b1, w2, b2, w3, b3, w4, b4) with w_i in (in, out) layout."""
    n, d_in = glo_latent.shape
    half = input_x.shape[-1]

    w1, b1, w2, b2, w3, b3, w4, b4 = params
    bf16 = jnp.bfloat16
    w1, w2, w3 = (w.astype(bf16) for w in (w1, w2, w3))
    # Split the last layer into the a / b halves and pre-transpose to (half, 128)
    # so the kernel emits (half, BM) results directly (lane-dense in BM).
    w4a_t = w4[:, :half].T.astype(bf16)
    w4b_t = w4[:, half:].T.astype(bf16)
    b4a = b4[:, :half].T            # (half, 1), f32
    b4b = b4[:, half:].T            # (half, 1), f32

    # Row tile: multiple of 128 (MXU-aligned M, lane-dense transposed output);
    # shrink for tiny batches so the demo is a single grid step.
    bm = _round_up(max(1, min(block_rows, n)), 128)
    n_pad = _round_up(n, bm)

    if n_pad != n:
        glo_latent = jnp.pad(glo_latent, ((0, n_pad - n), (0, 0)))
        input_x = jnp.pad(input_x, ((0, n_pad - n), (0, 0)))

    # Transposed view of input_x: (half, N_pad).  half is tiny, so this XLA
    # transpose (and the inverse one on the output) is cheap.
    x_t = input_x.T

    def full_spec(shape):
        return pl.BlockSpec(shape, lambda i: (0, 0))

    out_t = pl.pallas_call(
        glo_mlp_kernel,
        out_shape=jax.ShapeDtypeStruct((half, n_pad), jnp.float32),
        grid_spec=pltpu.PrefetchScalarGridSpec(
            num_scalar_prefetch=0,
            grid=(n_pad // bm,),
            in_specs=[
                pl.BlockSpec((bm, d_in), lambda i: (i, 0)),     # glo_latent rows
                pl.BlockSpec((half, bm), lambda i: (0, i)),     # input_x^T cols
                full_spec(w1.shape), full_spec(b1.shape),
                full_spec(w2.shape), full_spec(b2.shape),
                full_spec(w3.shape), full_spec(b3.shape),
                full_spec(w4a_t.shape), full_spec(b4a.shape),
                full_spec(w4b_t.shape), full_spec(b4b.shape),
            ],
            out_specs=pl.BlockSpec((half, bm), lambda i: (0, i)),
        ),
        compiler_params=pltpu.CompilerParams(
            dimension_semantics=("parallel",)),
    )(glo_latent, x_t, w1, b1, w2, b2, w3, b3, w4a_t, b4a, w4b_t, b4b)

    return out_t[:, :n].T


def init_params(key, input_dim, output_dim):
    """Deterministic synthetic init (PyTorch-style uniform fan-in scaling)."""
    dims = [(input_dim, 128), (128, 256), (256, 128), (128, output_dim)]
    params = []
    for (fan_in, fan_out) in dims:
        key, kw, kb = jax.random.split(key, 3)
        bound = 1.0 / jnp.sqrt(fan_in)
        # (in, out) layout so the trunk does `h @ W`.
        w = jax.random.uniform(kw, (fan_in, fan_out), jnp.float32, -bound, bound)
        b = jax.random.uniform(kb, (1, fan_out), jnp.float32, -bound, bound)
        params.extend([w, b])
    return tuple(params)


def reference_forward(glo_latent, input_x, params):
    """Pure-JAX reference with the same bf16-operand / f32-accumulate policy."""
    w1, b1, w2, b2, w3, b3, w4, b4 = params
    bf16, f32 = jnp.bfloat16, jnp.float32
    w1, w2, w3, w4 = (w.astype(bf16) for w in (w1, w2, w3, w4))
    h = glo_latent.astype(bf16)
    h = _silu(jnp.dot(h, w1, preferred_element_type=f32) + b1)
    h = _silu(jnp.dot(h.astype(bf16), w2, preferred_element_type=f32) + b2)
    h = _silu(jnp.dot(h.astype(bf16), w3, preferred_element_type=f32) + b3)
    out = jnp.dot(h.astype(bf16), w4, preferred_element_type=f32) + b4
    half = out.shape[-1] // 2
    a, b = out[:, :half], out[:, half:]
    return input_x * jnp.exp(jnp.minimum(a, 3.0)) + b


if __name__ == "__main__":
    input_dim = 32
    output_dim = 8          # split into a, b of 4 each
    n = 16                  # number of gaussians / rows

    key = jax.random.PRNGKey(0)
    kp, kg, kx = jax.random.split(key, 3)

    params = init_params(kp, input_dim, output_dim)
    glo_latent = jax.random.normal(kg, (n, input_dim), jnp.float32)
    input_x = jax.random.normal(kx, (n, output_dim // 2), jnp.float32)

    out = glo_mlp_forward(glo_latent, input_x, params)
    out = jax.block_until_ready(out)

    ref = reference_forward(glo_latent, input_x, params)
    assert out.shape == (n, output_dim // 2)
    assert jnp.allclose(out, ref, atol=1e-3, rtol=1e-3)

    print("KERNEL_OK")
</pallas_src>

<mosaic_0001>
module attributes {stable_mosaic.version = 11 : i64} {
  func.func @glo_mlp_kernel(%arg0: i32, %arg1: memref<128x32xf32, #tpu.memory_space<vmem>>, %arg2: memref<4x128xf32, #tpu.memory_space<vmem>>, %arg3: memref<32x128xbf16, #tpu.memory_space<vmem>>, %arg4: memref<1x128xf32, #tpu.memory_space<vmem>>, %arg5: memref<128x256xbf16, #tpu.memory_space<vmem>>, %arg6: memref<1x256xf32, #tpu.memory_space<vmem>>, %arg7: memref<256x128xbf16, #tpu.memory_space<vmem>>, %arg8: memref<1x128xf32, #tpu.memory_space<vmem>>, %arg9: memref<4x128xbf16, #tpu.memory_space<vmem>>, %arg10: memref<4x1xf32, #tpu.memory_space<vmem>>, %arg11: memref<4x128xbf16, #tpu.memory_space<vmem>>, %arg12: memref<4x1xf32, #tpu.memory_space<vmem>>, %arg13: memref<4x128xf32, #tpu.memory_space<vmem>>) attributes {dimension_semantics = [#tpu.dimension_semantics<parallel>], iteration_bounds = array<i64: 1>, scalar_prefetch = 0 : i64, scratch_operands = 0 : i64, tpu.core_type = #tpu.core_type<tc>, window_params = [{transform_indices = @transform_0, window_bounds = array<i64: 128, 32>}, {transform_indices = @transform_1, window_bounds = array<i64: 4, 128>}, {pipeline_mode = #tpu.pipeline_mode<synchronous>, transform_indices = @transform_2, window_bounds = array<i64: 32, 128>}, {pipeline_mode = #tpu.pipeline_mode<synchronous>, transform_indices = @transform_3, window_bounds = array<i64: 1, 128>}, {pipeline_mode = #tpu.pipeline_mode<synchronous>, transform_indices = @transform_4, window_bounds = array<i64: 128, 256>}, {pipeline_mode = #tpu.pipeline_mode<synchronous>, transform_indices = @transform_5, window_bounds = array<i64: 1, 256>}, {pipeline_mode = #tpu.pipeline_mode<synchronous>, transform_indices = @transform_6, window_bounds = array<i64: 256, 128>}, {pipeline_mode = #tpu.pipeline_mode<synchronous>, transform_indices = @transform_7, window_bounds = array<i64: 1, 128>}, {pipeline_mode = #tpu.pipeline_mode<synchronous>, transform_indices = @transform_8, window_bounds = array<i64: 4, 128>}, {pipeline_mode = #tpu.pipeline_mode<synchronous>, transform_indices = @transform_9, window_bounds = array<i64: 4, 1>}, {pipeline_mode = #tpu.pipeline_mode<synchronous>, transform_indices = @transform_10, window_bounds = array<i64: 4, 128>}, {pipeline_mode = #tpu.pipeline_mode<synchronous>, transform_indices = @transform_11, window_bounds = array<i64: 4, 1>}, {transform_indices = @transform_12, window_bounds = array<i64: 4, 128>}]} {
    %c0 = arith.constant 0 : index
    %c0_0 = arith.constant 0 : index
    %0 = vector.load %arg1[%c0, %c0_0] : memref<128x32xf32, #tpu.memory_space<vmem>>, vector<128x32xf32>
    %1 = arith.truncf %0 : vector<128x32xf32> to vector<128x32xbf16>
    %c0_1 = arith.constant 0 : index
    %c0_2 = arith.constant 0 : index
    %2 = vector.load %arg3[%c0_1, %c0_2] : memref<32x128xbf16, #tpu.memory_space<vmem>>, vector<32x128xbf16>
    %cst = arith.constant dense<0.000000e+00> : vector<128x128xf32>
    %3 = tpu.matmul %1, %2, %cst {dimension_numbers = #tpu.dot_dimension_numbers<[1], [0], [0], [1], [0, 0, 1, 1], [], []>} : vector<128x32xbf16>, vector<32x128xbf16>, vector<128x128xf32> -> vector<128x128xf32>
    %c0_3 = arith.constant 0 : index
    %c0_4 = arith.constant 0 : index
    %4 = vector.load %arg4[%c0_3, %c0_4] : memref<1x128xf32, #tpu.memory_space<vmem>>, vector<1x128xf32>
    %5 = vector.broadcast %4 : vector<1x128xf32> to vector<128x128xf32>
    %6 = arith.addf %3, %5 : vector<128x128xf32>
    %7 = arith.negf %6 : vector<128x128xf32>
    %8 = math.exp %7 : vector<128x128xf32>
    %cst_5 = arith.constant 1.000000e+00 : f32
    %9 = vector.broadcast %cst_5 : f32 to vector<128x128xf32>
    %10 = arith.addf %9, %8 : vector<128x128xf32>
    %11 = arith.divf %9, %10 : vector<128x128xf32>
    %12 = arith.mulf %6, %11 : vector<128x128xf32>
    %13 = arith.truncf %12 : vector<128x128xf32> to vector<128x128xbf16>
    %c0_6 = arith.constant 0 : index
    %c0_7 = arith.constant 0 : index
    %14 = vector.load %arg5[%c0_6, %c0_7] : memref<128x256xbf16, #tpu.memory_space<vmem>>, vector<128x256xbf16>
    %cst_8 = arith.constant dense<0.000000e+00> : vector<128x256xf32>
    %15 = tpu.matmul %13, %14, %cst_8 {dimension_numbers = #tpu.dot_dimension_numbers<[1], [0], [0], [1], [0, 0, 1, 1], [], []>} : vector<128x128xbf16>, vector<128x256xbf16>, vector<128x256xf32> -> vector<128x256xf32>
    %c0_9 = arith.constant 0 : index
    %c0_10 = arith.constant 0 : index
    %16 = vector.load %arg6[%c0_9, %c0_10] : memref<1x256xf32, #tpu.memory_space<vmem>>, vector<1x256xf32>
    %17 = vector.broadcast %16 : vector<1x256xf32> to vector<128x256xf32>
    %18 = arith.addf %15, %17 : vector<128x256xf32>
    %19 = arith.negf %18 : vector<128x256xf32>
    %20 = math.exp %19 : vector<128x256xf32>
    %cst_11 = arith.constant 1.000000e+00 : f32
    %21 = vector.broadcast %cst_11 : f32 to vector<128x256xf32>
    %22 = arith.addf %21, %20 : vector<128x256xf32>
    %23 = arith.divf %21, %22 : vector<128x256xf32>
    %24 = arith.mulf %18, %23 : vector<128x256xf32>
    %25 = arith.truncf %24 : vector<128x256xf32> to vector<128x256xbf16>
    %c0_12 = arith.constant 0 : index
    %c0_13 = arith.constant 0 : index
    %26 = vector.load %arg7[%c0_12, %c0_13] : memref<256x128xbf16, #tpu.memory_space<vmem>>, vector<256x128xbf16>
    %cst_14 = arith.constant dense<0.000000e+00> : vector<128x128xf32>
    %27 = tpu.matmul %25, %26, %cst_14 {dimension_numbers = #tpu.dot_dimension_numbers<[1], [0], [0], [1], [0, 0, 1, 1], [], []>} : vector<128x256xbf16>, vector<256x128xbf16>, vector<128x128xf32> -> vector<128x128xf32>
    %c0_15 = arith.constant 0 : index
    %c0_16 = arith.constant 0 : index
    %28 = vector.load %arg8[%c0_15, %c0_16] : memref<1x128xf32, #tpu.memory_space<vmem>>, vector<1x128xf32>
    %29 = vector.broadcast %28 : vector<1x128xf32> to vector<128x128xf32>
    %30 = arith.addf %27, %29 : vector<128x128xf32>
    %31 = arith.negf %30 : vector<128x128xf32>
    %32 = math.exp %31 : vector<128x128xf32>
    %cst_17 = arith.constant 1.000000e+00 : f32
    %33 = vector.broadcast %cst_17 : f32 to vector<128x128xf32>
    %34 = arith.addf %33, %32 : vector<128x128xf32>
    %35 = arith.divf %33, %34 : vector<128x128xf32>
    %36 = arith.mulf %30, %35 : vector<128x128xf32>
    %37 = arith.truncf %36 : vector<128x128xf32> to vector<128x128xbf16>
    %c0_18 = arith.constant 0 : index
    %c0_19 = arith.constant 0 : index
    %38 = vector.load %arg9[%c0_18, %c0_19] : memref<4x128xbf16, #tpu.memory_space<vmem>>, vector<4x128xbf16>
    %cst_20 = arith.constant dense<0.000000e+00> : vector<4x128xf32>
    %39 = tpu.matmul %38, %37, %cst_20 {dimension_numbers = #tpu.dot_dimension_numbers<[1], [1], [0], [0], [0, 0, 1, 0], [], []>} : vector<4x128xbf16>, vector<128x128xbf16>, vector<4x128xf32> -> vector<4x128xf32>
    %c0_21 = arith.constant 0 : index
    %c0_22 = arith.constant 0 : index
    %40 = vector.load %arg10[%c0_21, %c0_22] : memref<4x1xf32, #tpu.memory_space<vmem>>, vector<4x1xf32>
    %41 = vector.broadcast %40 : vector<4x1xf32> to vector<4x128xf32>
    %42 = arith.addf %39, %41 : vector<4x128xf32>
    %c0_23 = arith.constant 0 : index
    %c0_24 = arith.constant 0 : index
    %43 = vector.load %arg11[%c0_23, %c0_24] : memref<4x128xbf16, #tpu.memory_space<vmem>>, vector<4x128xbf16>
    %cst_25 = arith.constant dense<0.000000e+00> : vector<4x128xf32>
    %44 = tpu.matmul %43, %37, %cst_25 {dimension_numbers = #tpu.dot_dimension_numbers<[1], [1], [0], [0], [0, 0, 1, 0], [], []>} : vector<4x128xbf16>, vector<128x128xbf16>, vector<4x128xf32> -> vector<4x128xf32>
    %c0_26 = arith.constant 0 : index
    %c0_27 = arith.constant 0 : index
    %45 = vector.load %arg12[%c0_26, %c0_27] : memref<4x1xf32, #tpu.memory_space<vmem>>, vector<4x1xf32>
    %46 = vector.broadcast %45 : vector<4x1xf32> to vector<4x128xf32>
    %47 = arith.addf %44, %46 : vector<4x128xf32>
    %c0_28 = arith.constant 0 : index
    %c0_29 = arith.constant 0 : index
    %48 = vector.load %arg2[%c0_28, %c0_29] : memref<4x128xf32, #tpu.memory_space<vmem>>, vector<4x128xf32>
    %cst_30 = arith.constant 3.000000e+00 : f32
    %49 = vector.broadcast %cst_30 : f32 to vector<4x128xf32>
    %50 = arith.minimumf %42, %49 : vector<4x128xf32>
    %51 = math.exp %50 : vector<4x128xf32>
    %52 = arith.mulf %48, %51 : vector<4x128xf32>
    %53 = arith.addf %52, %47 : vector<4x128xf32>
    %c0_31 = arith.constant 0 : index
    %c0_32 = arith.constant 0 : index
    %54 = vector.load %arg13[%c0_31, %c0_32] : memref<4x128xf32, #tpu.memory_space<vmem>>, vector<4x128xf32>
    tpu.vector_store %arg13[%c0_31, %c0_32], %53 {strides = array<i32>} : memref<4x128xf32, #tpu.memory_space<vmem>>, vector<4x128xf32>,
    return
  }
  func.func @transform_0(%arg0: i32) -> (i32, i32) {
    %c0_i32 = arith.constant 0 : i32
    %c0_i32_0 = arith.constant 0 : i32
    return %arg0, %c0_i32 : i32, i32
  }
  func.func @transform_1(%arg0: i32) -> (i32, i32) {
    %c0_i32 = arith.constant 0 : i32
    %c0_i32_0 = arith.constant 0 : i32
    return %c0_i32, %arg0 : i32, i32
  }
  func.func @transform_2(%arg0: i32) -> (i32, i32) {
    %c0_i32 = arith.constant 0 : i32
    %c0_i32_0 = arith.constant 0 : i32
    %c0_i32_1 = arith.constant 0 : i32
    return %c0_i32, %c0_i32_0 : i32, i32
  }
  func.func @transform_3(%arg0: i32) -> (i32, i32) {
    %c0_i32 = arith.constant 0 : i32
    %c0_i32_0 = arith.constant 0 : i32
    %c0_i32_1 = arith.constant 0 : i32
    return %c0_i32, %c0_i32_0 : i32, i32
  }
  func.func @transform_4(%arg0: i32) -> (i32, i32) {
    %c0_i32 = arith.constant 0 : i32
    %c0_i32_0 = arith.constant 0 : i32
    %c0_i32_1 = arith.constant 0 : i32
    return %c0_i32, %c0_i32_0 : i32, i32
  }
  func.func @transform_5(%arg0: i32) -> (i32, i32) {
    %c0_i32 = arith.constant 0 : i32
    %c0_i32_0 = arith.constant 0 : i32
    %c0_i32_1 = arith.constant 0 : i32
    return %c0_i32, %c0_i32_0 : i32, i32
  }
  func.func @transform_6(%arg0: i32) -> (i32, i32) {
    %c0_i32 = arith.constant 0 : i32
    %c0_i32_0 = arith.constant 0 : i32
    %c0_i32_1 = arith.constant 0 : i32
    return %c0_i32, %c0_i32_0 : i32, i32
  }
  func.func @transform_7(%arg0: i32) -> (i32, i32) {
    %c0_i32 = arith.constant 0 : i32
    %c0_i32_0 = arith.constant 0 : i32
    %c0_i32_1 = arith.constant 0 : i32
    return %c0_i32, %c0_i32_0 : i32, i32
  }
  func.func @transform_8(%arg0: i32) -> (i32, i32) {
    %c0_i32 = arith.constant 0 : i32
    %c0_i32_0 = arith.constant 0 : i32
    %c0_i32_1 = arith.constant 0 : i32
    return %c0_i32, %c0_i32_0 : i32, i32
  }
  func.func @transform_9(%arg0: i32) -> (i32, i32) {
    %c0_i32 = arith.constant 0 : i32
    %c0_i32_0 = arith.constant 0 : i32
    %c0_i32_1 = arith.constant 0 : i32
    return %c0_i32, %c0_i32_0 : i32, i32
  }
  func.func @transform_10(%arg0: i32) -> (i32, i32) {
    %c0_i32 = arith.constant 0 : i32
    %c0_i32_0 = arith.constant 0 : i32
    %c0_i32_1 = arith.constant 0 : i32
    return %c0_i32, %c0_i32_0 : i32, i32
  }
  func.func @transform_11(%arg0: i32) -> (i32, i32) {
    %c0_i32 = arith.constant 0 : i32
    %c0_i32_0 = arith.constant 0 : i32
    %c0_i32_1 = arith.constant 0 : i32
    return %c0_i32, %c0_i32_0 : i32, i32
  }
  func.func @transform_12(%arg0: i32) -> (i32, i32) {
    %c0_i32 = arith.constant 0 : i32
    %c0_i32_0 = arith.constant 0 : i32
    return %c0_i32, %arg0 : i32, i32
  }
}

</mosaic_0001>

<bundles_post_ra>
// kernel: tpu_custom_call.1
= control target key start
LH: loop header
LB: loop body
LE: loop exit
PB: predicated region body
PF: predicated region fallthrough
CT: control target
= control target key end

     0   :  { %17 = vsyncpa [#allocation3], 0  ;;  %s2460_s0 = inlined_call_operand.vmem [shape: f32[128,32], index: 0, kind: input, shape index: {}]   ;;  %s2461_s1 = inlined_call_operand.vmem [shape: f32[4,128], index: 1, kind: input, shape index: {}]   ;;  %s2462_s2 = inlined_call_operand.vmem [shape: bf16[32,128], index: 2, kind: input, shape index: {}]   ;;  %s2463_s3 = inlined_call_operand.vmem [shape: f32[1,128], index: 3, kind: input, shape index: {}]   ;;  %s2464_s4 = inlined_call_operand.vmem [shape: bf16[128,256], index: 4, kind: input, shape index: {}]   ;;  %s2465_s5 = inlined_call_operand.vmem [shape: f32[1,256], index: 5, kind: input, shape index: {}]   ;;  %s2466_s6 = inlined_call_operand.hbm [shape: bf16[256,128], index: 6, kind: input, shape index: {}]   ;;  %s2467_s7 = inlined_call_operand.vmem [shape: f32[1,128], index: 7, kind: input, shape index: {}]   ;;  %s2468_s8 = inlined_call_operand.vmem [shape: bf16[4,128], index: 8, kind: input, shape index: {}]   ;;  %s2469_s9 = inlined_call_operand.vmem [shape: f32[4,1], index: 9, kind: input, shape index: {}]   ;;  %s2470_s10 = inlined_call_operand.vmem [shape: bf16[4,128], index: 10, kind: input, shape index: {}]   ;;  %s2471_s11 = inlined_call_operand.vmem [shape: f32[4,1], index: 11, kind: input, shape index: {}]   ;;  %s2472_s12 = inlined_call_operand.hbm [shape: f32[4,128], index: 12, kind: output, shape index: {}]  }
   0x1   :  { %18 = vsyncpa [#allocation4], 0  ;;  %s1891_s21 = smov [#allocation2]   ;;  %s1843_s25 = scalar_lea.hbm %s2466_s6, 2048 }
   0x2   :  { %s36_s22 = sshll.u32 %s1891_s21, 4  ;;  %p1844_p0 = scmp.ne.s32.totalorder %s2466_s6, %s1843_s25  ;;  %s37_s22 = int_to_ptr.vmem [resolvable:$true] %s36_s22 }
   0x3   :  { %p1847_p1 = scmp.lt.u32.totalorder %s1843_s25, %s2466_s6 }
   0x5   :  { %p1849_p2 = pnand %p1847_p1, %p1844_p0 }
   0x7   :  { %1852 = shalt.err (!%p1849_p2)
}
   0x8   :  { %s1853_s30 = scalar_lea.vmem %s37_s22, 2048  ;;  %p1858_p4 = scmp.lt.s32.totalorder %s37_s22, %s37_s22 }
   0x9   :  { %p1854_p3 = scmp.ne.s32.totalorder %s37_s22, %s1853_s30  ;;  %p1859_p5 = scmp.lt.s32.totalorder %s1853_s30, %s1853_s30 }
   0xb   :  { %p1860_p6 = por %p1859_p5, %p1858_p4 }
   0xd   :  { %p1861_p7 = pnand %p1860_p6, %p1854_p3 }
   0xf   :  { %1864 = shalt.err (!%p1861_p7)
}
  0x10   :  { %s1892_s13 = smov 64   ;;  %s1893_s14 = smov 4  }
  0x11   :  { %42 = dma.hbm_to_vmem [thread:$0]  %s2466_s6, 2048, %s37_s22, [#allocation3], %s1892_s13, %s1892_s13, %s1893_s14  }
  0x12   :  { %1887 = dma.done.wait [#allocation3], 2048  }
  0x13   :  { %1888 = vsyncadd [#allocation3], 4294965248  ;;  %v1543_v0 = vld [vmem:[%s2462_s2] sm:$0xff]   ;;  %v1544_v1 = vld [vmem:[%s2462_s2 + $0x8] sm:$0xff]   ;;  %vm104_vm0 = vcmask 261120   ;;  %v1894_v42 = vmov 0  }
  0x14   :  { %1475 = vmatprep.subr.bf16.mxu0 %v1543_v0  ;;  %v57_v2 = vld [vmem:[%s2460_s0] sm:$0xff]  ;;  %v58_v3 = vld [vmem:[%s2460_s0 + $0x8] sm:$0xff]  ;;  %v59_v5 = vld [vmem:[%s2460_s0 + $0x10] sm:$0xff]  ;;  %486 = vmatprep.mubr.bf16.mxu1 %v1894_v42  ;;  %vm1896_vm1 = vmmov 0  }
  0x15   :  { %1476 = vmatpush3.bf16.msra.mxu0 %v1543_v0  ;;  %v73_v4 = vpack.c.bf16 %v58_v3, %v57_v2  ;;  %v60_v6 = vld [vmem:[%s2460_s0 + $0x18] sm:$0xff]  ;;  %v61_v7 = vld [vmem:[%s2460_s0 + $0x20] sm:$0xff]  ;;  %v62_v8 = vld [vmem:[%s2460_s0 + $0x28] sm:$0xff]  ;;  %1542 = vset.pattern.permute.xlu0 %v1894_v42 }
  0x16   :  { %1477 = vmatprep.subr.bf16.mxu0 %v1544_v1  ;;  %v74_v9 = vpack.c.bf16 %v60_v6, %v59_v5  ;;  %v75_v10 = vpack.c.bf16 %v62_v8, %v61_v7  ;;  %v63_v11 = vld [vmem:[%s2460_s0 + $0x30] sm:$0xff]  ;;  %v64_v12 = vld [vmem:[%s2460_s0 + $0x38] sm:$0xff]  ;;  %v65_v13 = vld [vmem:[%s2460_s0 + $0x40] sm:$0xff] }
  0x17   :  { %1479 = vmatprep.mubr.msk.bf16.mxu0 %vm104_vm0, %v73_v4  ;;  %v66_v14 = vld [vmem:[%s2460_s0 + $0x48] sm:$0xff]  ;;  %v76_v15 = vpack.c.bf16 %v64_v12, %v63_v11  ;;  %v67_v17 = vld [vmem:[%s2460_s0 + $0x50] sm:$0xff]  ;;  %v68_v18 = vld [vmem:[%s2460_s0 + $0x58] sm:$0xff] }
  0x18   :  { %v77_v16 = vpack.c.bf16 %v66_v14, %v65_v13  ;;  %v69_v19 = vld [vmem:[%s2460_s0 + $0x60] sm:$0xff]  ;;  %v70_v20 = vld [vmem:[%s2460_s0 + $0x68] sm:$0xff]  ;;  %v78_v21 = vpack.c.bf16 %v68_v18, %v67_v17  ;;  %v71_v23 = vld [vmem:[%s2460_s0 + $0x70] sm:$0xff] }
  0x19   :  { %1478 = vmatpush3.bf16.msra.mxu0 %v1544_v1  ;;  %v79_v22 = vpack.c.bf16 %v70_v20, %v69_v19  ;;  %v72_v24 = vld [vmem:[%s2460_s0 + $0x78] sm:$0xff]  ;;  %v1545_v26 = vld [vmem:[%s2464_s4 + $0x4] ss:$8 sps:$4 sm:$0xff]   ;;  %v1547_v27 = vld [vmem:[%s2464_s4] ss:$8 sps:$4 sm:$0xff]  }
  0x1a   :  { %v80_v25 = vpack.c.bf16 %v72_v24, %v71_v23  ;;  %454 = vmatprep.subr.bf16.mxu1 %v1545_v26  ;;  %v1548_v28 = vld [vmem:[%s2464_s4 + $0x14] ss:$8 sps:$4 sm:$0xff]   ;;  %v1550_v29 = vld [vmem:[%s2464_s4 + $0x10] ss:$8 sps:$4 sm:$0xff]   ;;  %v1551_v30 = vld [vmem:[%s2464_s4 + $0x24] ss:$8 sps:$4 sm:$0xff]  }
  0x1b   :  { %455 = vmatpush1.bf16.msra.mxu1 %v1547_v27  ;;  %v1553_v31 = vld [vmem:[%s2464_s4 + $0x20] ss:$8 sps:$4 sm:$0xff]   ;;  %v1554_v32 = vld [vmem:[%s2464_s4 + $0x34] ss:$8 sps:$4 sm:$0xff]   ;;  %v1556_v33 = vld [vmem:[%s2464_s4 + $0x30] ss:$8 sps:$4 sm:$0xff]  }
  0x1c   :  { %1480 = vmatmul.mubr.msk.bf16.vlgmr.msra.gmra.mrb[0].mxu0 %vm104_vm0, %v74_v9  ;;  %456 = vmatprep.subr.bf16.mxu1 %v1548_v28  ;;  %v1557_v34 = vld [vmem:[%s2464_s4 + $0x44] ss:$8 sps:$4 sm:$0xff]   ;;  %v1559_v35 = vld [vmem:[%s2464_s4 + $0x40] ss:$8 sps:$4 sm:$0xff]   ;;  %v1560_v36 = vld [vmem:[%s2464_s4 + $0x54] ss:$8 sps:$4 sm:$0xff]  }
  0x1d   :  { %1483 = vmatprep.mubr.msk.bf16.mxu0 %vm104_vm0, %v75_v10  ;;  %v1562_v37 = vld [vmem:[%s2464_s4 + $0x50] ss:$8 sps:$4 sm:$0xff]   ;;  %v1563_v38 = vld [vmem:[%s2464_s4 + $0x64] ss:$8 sps:$4 sm:$0xff]   ;;  %v1565_v39 = vld [vmem:[%s2464_s4 + $0x60] ss:$8 sps:$4 sm:$0xff]  }
  0x1e   :  { %v1566_v40 = vld [vmem:[%s2464_s4 + $0x74] ss:$8 sps:$4 sm:$0xff]   ;;  %v1568_v41 = vld [vmem:[%s2464_s4 + $0x70] ss:$8 sps:$4 sm:$0xff]   ;;  %v2090_v43 = vld [vmem:[%s2463_s3] ss:$0 sm:$0xff] }
  0x1f   :  { %457 = vmatpush1.bf16.msra.mxu1 %v1550_v29 }
  0x20   :  { %458 = vmatprep.subr.bf16.mxu1 %v1551_v30 }
  0x23   :  { %459 = vmatpush1.bf16.msra.mxu1 %v1553_v31 }
  0x24   :  { %1484 = vmatmul.mubr.msk.bf16.gmra.mrb[4].mxu0 %vm104_vm0, %v76_v15  ;;  %460 = vmatprep.subr.bf16.mxu1 %v1554_v32 }
  0x25   :  { %1487 = vmatprep.mubr.msk.bf16.mxu0 %vm104_vm0, %v77_v16 }
  0x27   :  { %461 = vmatpush1.bf16.msra.mxu1 %v1556_v33 }
  0x28   :  { %462 = vmatprep.subr.bf16.mxu1 %v1557_v34 }
  0x2b   :  { %463 = vmatpush1.bf16.msra.mxu1 %v1559_v35 }
  0x2c   :  { %1488 = vmatmul.mubr.msk.bf16.gmra.mrb[8].mxu0 %vm104_vm0, %v78_v21  ;;  %464 = vmatprep.subr.bf16.mxu1 %v1560_v36 }
  0x2d   :  { %1491 = vmatprep.mubr.msk.bf16.mxu0 %vm104_vm0, %v79_v22 }
  0x2f   :  { %465 = vmatpush1.bf16.msra.mxu1 %v1562_v37 }
  0x30   :  { %466 = vmatprep.subr.bf16.mxu1 %v1563_v38 }
  0x33   :  { %467 = vmatpush1.bf16.msra.mxu1 %v1565_v39 }
  0x34   :  { %1492 = vmatmul.mubr.msk.bf16.gmra.mrb[12].mxu0 %vm104_vm0, %v80_v25  ;;  %468 = vmatprep.subr.bf16.mxu1 %v1566_v40 }
  0x37   :  { %469 = vmatpush1.bf16.msra.mxu1 %v1568_v41 }
  0xef   :  { %v1481_v44 = vpop.f32.mrb[0].mxu0 }
  0xf0   :  { %v2093_v45 = vadd.f32 %v1481_v44, %v2090_v43  ;;  %v163_v46 = vpop.f32.mrb[1].mxu0 }
  0xf1   :  { %v2096_v47 = vadd.f32 %v2090_v43, %v163_v46  ;;  %v1482_v48 = vpop.f32.mrb[2].mxu0 }
  0xf2   :  { %v1288_v49 = vmul.f32 -1.442695, %v2093_v45  ;;  %v2100_v50 = vadd.f32 %v1482_v48, %v2090_v43  ;;  %v166_v51 = vpop.f32.mrb[3].mxu0 }
  0xf3   :  { %v1286_v52 = vmul.f32 -1.442695, %v2096_v47  ;;  %v2104_v53 = vadd.f32 %v2090_v43, %v166_v51 }
  0xf4   :  { %1585 = vpow2.f32 %v1288_v49  ;;  %v1289_v54 = vmul.f32 -1.442695, %v2100_v50 }
  0xf5   :  { %1587 = vpow2.f32 %v1286_v52  ;;  %v1287_v55 = vmul.f32 -1.442695, %v2104_v53 }
  0xf6   :  { %1589 = vpow2.f32 %v1289_v54 }
  0xf7   :  { %1591 = vpow2.f32 %v1287_v55  ;;  %v1485_v56 = vpop.f32.mrb[4].mxu0 }
  0xf8   :  { %v2109_v57 = vadd.f32 %v1485_v56, %v2090_v43  ;;  %v179_v58 = vpop.f32.mrb[5].mxu0 }
  0xf9   :  { %v2112_v59 = vadd.f32 %v2090_v43, %v179_v58  ;;  %v1486_v60 = vpop.f32.mrb[6].mxu0 }
  0xfa   :  { %v1292_v61 = vmul.f32 -1.442695, %v2109_v57  ;;  %v2116_v62 = vadd.f32 %v1486_v60, %v2090_v43  ;;  %v182_v63 = vpop.f32.mrb[7].mxu0 }
  0xfb   :  { %v1290_v0 = vmul.f32 -1.442695, %v2112_v59  ;;  %v2120_v1 = vadd.f32 %v2090_v43, %v182_v63 }
  0xfc   :  { %1593 = vpow2.f32 %v1292_v61  ;;  %v1293_v2 = vmul.f32 -1.442695, %v2116_v62 }
  0xfd   :  { %1595 = vpow2.f32 %v1290_v0  ;;  %v1291_v3 = vmul.f32 -1.442695, %v2120_v1 }
  0xfe   :  { %v1586_v4 = vpop.eup %1585  ;;  %1597 = vpow2.f32 %v1293_v2 }
  0xff   :  { %v1588_v5 = vpop.eup %1587  ;;  %v276_v6 = vadd.f32 1.0, %v1586_v4  ;;  %1599 = vpow2.f32 %v1291_v3  ;;  %v1489_v7 = vpop.f32.mrb[8].mxu0 }
 0x100   :  { %v1590_v8 = vpop.eup %1589  ;;  %v274_v9 = vadd.f32 1.0, %v1588_v5  ;;  %v2125_v10 = vadd.f32 %v1489_v7, %v2090_v43  ;;  %v195_v11 = vpop.f32.mrb[9].mxu0 }
 0x101   :  { %v1592_v12 = vpop.eup %1591  ;;  %1601 = vrcp.f32 %v276_v6  ;;  %v277_v13 = vadd.f32 1.0, %v1590_v8  ;;  %v2128_v14 = vadd.f32 %v2090_v43, %v195_v11  ;;  %v1490_v15 = vpop.f32.mrb[10].mxu0 }
 0x102   :  { %1603 = vrcp.f32 %v274_v9  ;;  %v275_v16 = vadd.f32 1.0, %v1592_v12  ;;  %v1296_v17 = vmul.f32 -1.442695, %v2125_v10  ;;  %v2132_v18 = vadd.f32 %v1490_v15, %v2090_v43  ;;  %v198_v19 = vpop.f32.mrb[11].mxu0 }
 0x103   :  { %1605 = vrcp.f32 %v277_v13  ;;  %v1294_v20 = vmul.f32 -1.442695, %v2128_v14  ;;  %v2136_v21 = vadd.f32 %v2090_v43, %v198_v19 }
 0x104   :  { %1607 = vrcp.f32 %v275_v16  ;;  %v1297_v22 = vmul.f32 -1.442695, %v2132_v18 }
 0x105   :  { %1609 = vpow2.f32 %v1296_v17  ;;  %v1295_v23 = vmul.f32 -1.442695, %v2136_v21 }
 0x106   :  { %v1594_v24 = vpop.eup %1593  ;;  %1611 = vpow2.f32 %v1294_v20 }
 0x107   :  { %v1596_v25 = vpop.eup %1595  ;;  %v280_v26 = vadd.f32 1.0, %v1594_v24  ;;  %1613 = vpow2.f32 %v1297_v22  ;;  %v1493_v27 = vpop.f32.mrb[12].mxu0 }
 0x108   :  { %v1598_v28 = vpop.eup %1597  ;;  %v278_v29 = vadd.f32 1.0, %v1596_v25  ;;  %1615 = vpow2.f32 %v1295_v23  ;;  %v2141_v30 = vadd.f32 %v1493_v27, %v2090_v43  ;;  %v211_v31 = vpop.f32.mrb[13].mxu0 }
 0x109   :  { %v1600_v32 = vpop.eup %1599  ;;  %1617 = vrcp.f32 %v280_v26  ;;  %v281_v33 = vadd.f32 1.0, %v1598_v28  ;;  %v2144_v34 = vadd.f32 %v2090_v43, %v211_v31  ;;  %v1494_v35 = vpop.f32.mrb[14].mxu0 }
 0x10a   :  { %1619 = vrcp.f32 %v278_v29  ;;  %v279_v36 = vadd.f32 1.0, %v1600_v32  ;;  %v1300_v37 = vmul.f32 -1.442695, %v2141_v30  ;;  %v2148_v38 = vadd.f32 %v1494_v35, %v2090_v43  ;;  %v214_v39 = vpop.f32.mrb[15].mxu0 }
 0x10b   :  { %v1602_v40 = vpop.eup %1601  ;;  %1621 = vrcp.f32 %v281_v33  ;;  %v1298_v41 = vmul.f32 -1.442695, %v2144_v34  ;;  %v2152_v44 = vadd.f32 %v2090_v43, %v214_v39 }
 0x10c   :  { %v1604_v46 = vpop.eup %1603  ;;  %1623 = vrcp.f32 %v279_v36  ;;  %v1301_v48 = vmul.f32 -1.442695, %v2148_v38  ;;  %v324_v54 = vmul.f32 %v1602_v40, %v2093_v45 }
 0x10d   :  { %v1606_v49 = vpop.eup %1605  ;;  %1625 = vpow2.f32 %v1300_v37  ;;  %v1299_v51 = vmul.f32 -1.442695, %v2152_v44  ;;  %v322_v58 = vmul.f32 %v1604_v46, %v2096_v47  ;;  %v1575_v46 = vld [vmem:[#allocation2 + $0x58] sm:$0xff]  }
 0x10e   :  { %v1608_v52 = vpop.eup %1607  ;;  %v325_v55 = vmul.f32 %v1606_v49, %v2100_v50  ;;  %1627 = vpow2.f32 %v1298_v41  ;;  %v1573_v41 = vld [vmem:[#allocation2 + $0x50] sm:$0xff]   ;;  %v1577_v49 = vld [vmem:[#allocation2 + $0x60] sm:$0xff]  }
 0x10f   :  { %v1610_v56 = vpop.eup %1609  ;;  %v323_v43 = vmul.f32 %v1608_v52, %v2104_v53  ;;  %1629 = vpow2.f32 %v1301_v48  ;;  %v1576_v48 = vld [vmem:[#allocation2 + $0x18] sm:$0xff]   ;;  %v1580_v52 = vld [vmem:[#allocation2 + $0x28] sm:$0xff]  }
 0x110   :  { %v1612_v60 = vpop.eup %1611  ;;  %v284_v61 = vadd.f32 1.0, %v1610_v56  ;;  %1631 = vpow2.f32 %v1299_v51  ;;  %v339_v63 = vpack.c.bf16 %v325_v55, %v324_v54  ;;  %v1578_v51 = vld [vmem:[#allocation2 + $0x20] sm:$0xff]   ;;  %v1581_v54 = vld [vmem:[#allocation2 + $0x70] sm:$0xff]   ;;  %v1583_v56 = vld [vmem:[#allocation2 + $0x78] sm:$0xff]  }
 0x111   :  { %v1614_v0 = vpop.eup %1613  ;;  %v282_v2 = vadd.f32 1.0, %v1612_v60  ;;  %v338_v3 = vpack.c.bf16 %v323_v43, %v322_v58  ;;  %v1582_v55 = vld [vmem:[#allocation2 + $0x30] sm:$0xff]   ;;  %v1584_v58 = vld [vmem:[#allocation2 + $0x38] sm:$0xff]   ;;  %v364_v43 = vlaneseq }
 0x112   :  { %v1616_v4 = vpop.eup %1615  ;;  %1633 = vrcp.f32 %v284_v61  ;;  %v285_v5 = vadd.f32 1.0, %v1614_v0 }
 0x113   :  { %v1618_v45 = vpop.eup %1617  ;;  %1635 = vrcp.f32 %v282_v2  ;;  %v283_v50 = vadd.f32 1.0, %v1616_v4  ;;  %487 = vmatmul.mubr.bf16.vlgmr.msra.gmra.mrb[0].mxu1 %v338_v3  ;;  %v365_v60 = vshrl.u32 %v364_v43, 7 }
 0x114   :  { %v1620_v6 = vpop.eup %1619  ;;  %1637 = vrcp.f32 %v285_v5  ;;  %496 = vmatprep.mubr.bf16.mxu1 %v1894_v42  ;;  %v328_v7 = vmul.f32 %v1618_v45, %v2109_v57 }
 0x115   :  { %v1622_v47 = vpop.eup %1621  ;;  %1639 = vrcp.f32 %v283_v50  ;;  %v326_v11 = vmul.f32 %v1620_v6, %v2112_v59  ;;  %v366_v61 = vsub.s32 0, %v365_v60  ;;  %v370_v0 = vsub.s32 1, %v365_v60 }
 0x116   :  { %v1624_v53 = vpop.eup %1623  ;;  %v329_v8 = vmul.f32 %v1622_v47, %v2116_v62 }
 0x117   :  { %v1626_v9 = vpop.eup %1625  ;;  %v327_v12 = vmul.f32 %v1624_v53, %v2120_v1 }
 0x118   :  { %v1628_v13 = vpop.eup %1627  ;;  %v288_v15 = vadd.f32 1.0, %v1626_v9  ;;  %v341_v16 = vpack.c.bf16 %v329_v8, %v328_v7 }
 0x119   :  { %v1630_v17 = vpop.eup %1629  ;;  %v286_v19 = vadd.f32 1.0, %v1628_v13  ;;  %v340_v20 = vpack.c.bf16 %v327_v12, %v326_v11 }
 0x11a   :  { %v1632_v22 = vpop.eup %1631  ;;  %1641 = vrcp.f32 %v288_v15  ;;  %v289_v23 = vadd.f32 1.0, %v1630_v17 }
 0x11b   :  { %1643 = vrcp.f32 %v286_v19  ;;  %v287_v24 = vadd.f32 1.0, %v1632_v22  ;;  %497 = vmatmul.mubr.bf16.gmra.mrb[4].mxu1 %v339_v63  ;;  %v362_v63 = vld [vmem:[%s2465_s5] sm:$0x3] }
 0x11c   :  { %v1634_v57 = vpop.eup %1633  ;;  %1645 = vrcp.f32 %v289_v23  ;;  %506 = vmatprep.mubr.bf16.mxu1 %v1894_v42  ;;  %v2182_v2 = vrot.slane %v362_v63, %v366_v61  ;;  %v2184_v3 = vrot.slane %v362_v63, %v370_v0 }
 0x11d   :  { %v1636_v62 = vpop.eup %1635  ;;  %1647 = vrcp.f32 %v287_v24  ;;  %v332_v25 = vmul.f32 %v1634_v57, %v2125_v10 }
 0x11e   :  { %v1638_v59 = vpop.eup %1637  ;;  %v330_v27 = vmul.f32 %v1636_v62, %v2128_v14 }
 0x11f   :  { %v1640_v1 = vpop.eup %1639  ;;  %v333_v26 = vmul.f32 %v1638_v59, %v2132_v18 }
 0x120   :  { %v331_v28 = vmul.f32 %v1640_v1, %v2136_v21  ;;  %v1569_v21 = vld [vmem:[#allocation2 + $0x40] sm:$0xff]  }
 0x121   :  { %v343_v29 = vpack.c.bf16 %v333_v26, %v332_v25  ;;  %1393 = vmatprep.subr.bf16.mxu0 %v1569_v21 }
 0x122   :  { %v342_v31 = vpack.c.bf16 %v331_v28, %v330_v27 }
 0x123   :  { %507 = vmatmul.mubr.bf16.gmra.mrb[8].mxu1 %v340_v20 }
 0x124   :  { %v1642_v32 = vpop.eup %1641  ;;  %516 = vmatprep.mubr.bf16.mxu1 %v1894_v42 }
 0x125   :  { %v1644_v33 = vpop.eup %1643  ;;  %v336_v37 = vmul.f32 %v1642_v32, %v2141_v30  ;;  %v1570_v30 = vld [vmem:[#allocation2] sm:$0xff]  }
 0x126   :  { %v1646_v35 = vpop.eup %1645  ;;  %v334_v10 = vmul.f32 %v1644_v33, %v2144_v34  ;;  %1394 = vmatpush3.bf16.msra.mxu0 %v1570_v30  ;;  %v1571_v34 = vld [vmem:[#allocation2 + $0x48] sm:$0xff]  }
 0x127   :  { %v1648_v36 = vpop.eup %1647  ;;  %v337_v39 = vmul.f32 %v1646_v35, %v2148_v38  ;;  %v1572_v38 = vld [vmem:[#allocation2 + $0x8] sm:$0xff]   ;;  %1395 = vmatprep.subr.bf16.mxu0 %v1571_v34 }
 0x128   :  { %v335_v18 = vmul.f32 %v1648_v36, %v2152_v44  ;;  %v1574_v44 = vld [vmem:[#allocation2 + $0x10] sm:$0xff]  }
 0x129   :  { %v345_v14 = vpack.c.bf16 %v337_v39, %v336_v37 }
 0x12a   :  { %v344_v40 = vpack.c.bf16 %v335_v18, %v334_v10  ;;  %1396 = vmatpush3.bf16.msra.mxu0 %v1572_v38 }
 0x12b   :  { %517 = vmatmul.mubr.bf16.gmra.mrb[12].mxu1 %v341_v16  ;;  %1397 = vmatprep.subr.bf16.mxu0 %v1573_v41 }
 0x12c   :  { %526 = vmatprep.mubr.bf16.mxu1 %v1894_v42 }
 0x12e   :  { %1398 = vmatpush3.bf16.msra.mxu0 %v1574_v44 }
 0x12f   :  { %1399 = vmatprep.subr.bf16.mxu0 %v1575_v46 }
 0x132   :  { %1400 = vmatpush3.bf16.msra.mxu0 %v1576_v48 }
 0x133   :  { %527 = vmatmul.mubr.bf16.gmra.mrb[16].mxu1 %v342_v31  ;;  %1401 = vmatprep.subr.bf16.mxu0 %v1577_v49 }
 0x134   :  { %536 = vmatprep.mubr.bf16.mxu1 %v1894_v42 }
 0x136   :  { %1402 = vmatpush3.bf16.msra.mxu0 %v1578_v51 }
 0x13b   :  { %537 = vmatmul.mubr.bf16.gmra.mrb[20].mxu1 %v343_v29 }
 0x13c   :  { %546 = vmatprep.mubr.bf16.mxu1 %v1894_v42 }
 0x143   :  { %547 = vmatmul.mubr.bf16.gmra.mrb[24].mxu1 %v344_v40 }
 0x144   :  { %556 = vmatprep.mubr.bf16.mxu1 %v1894_v42  ;;  %v1579_v42 = vld [vmem:[#allocation2 + $0x68] sm:$0xff]  }
 0x145   :  { %1403 = vmatprep.subr.bf16.mxu0 %v1579_v42 }
 0x146   :  { %1404 = vmatpush3.bf16.msra.mxu0 %v1580_v52 }
 0x147   :  { %1405 = vmatprep.subr.bf16.mxu0 %v1581_v54 }
 0x14a   :  { %1406 = vmatpush3.bf16.msra.mxu0 %v1582_v55 }
 0x14b   :  { %557 = vmatmul.mubr.bf16.gmra.mrb[28].mxu1 %v345_v14  ;;  %1407 = vmatprep.subr.bf16.mxu0 %v1583_v56 }
 0x14e   :  { %1408 = vmatpush3.bf16.msra.mxu0 %v1584_v58 }
 0x1e6   :  { %v488_v4 = vpop.f32.mrb[0].mxu1 }
 0x1e7   :  { %v2187_v5 = vadd.f32 %v488_v4, %v2182_v2  ;;  %v490_v45 = vpop.f32.mrb[1].mxu1 }
 0x1e8   :  { %v2190_v50 = vadd.f32 %v490_v45, %v2184_v3  ;;  %v492_v6 = vpop.f32.mrb[2].mxu1 }
 0x1e9   :  { %v1318_v47 = vmul.f32 -1.442695, %v2187_v5  ;;  %v2194_v53 = vadd.f32 %v492_v6, %v2182_v2  ;;  %v494_v7 = vpop.f32.mrb[3].mxu1 }
 0x1ea   :  { %v1319_v8 = vmul.f32 -1.442695, %v2190_v50  ;;  %v2198_v9 = vadd.f32 %v494_v7, %v2184_v3 }
 0x1eb   :  { %1649 = vpow2.f32 %v1318_v47  ;;  %v1320_v11 = vmul.f32 -1.442695, %v2194_v53 }
 0x1ec   :  { %1651 = vpow2.f32 %v1319_v8  ;;  %v1321_v12 = vmul.f32 -1.442695, %v2198_v9 }
 0x1ed   :  { %1653 = vpow2.f32 %v1320_v11 }
 0x1ee   :  { %1655 = vpow2.f32 %v1321_v12  ;;  %v498_v13 = vpop.f32.mrb[4].mxu1 }
 0x1ef   :  { %v2203_v15 = vadd.f32 %v498_v13, %v2182_v2  ;;  %v500_v16 = vpop.f32.mrb[5].mxu1 }
 0x1f0   :  { %v2206_v17 = vadd.f32 %v500_v16, %v2184_v3  ;;  %v502_v19 = vpop.f32.mrb[6].mxu1 }
 0x1f1   :  { %v1322_v20 = vmul.f32 -1.442695, %v2203_v15  ;;  %v2210_v22 = vadd.f32 %v502_v19, %v2182_v2  ;;  %v504_v23 = vpop.f32.mrb[7].mxu1 }
 0x1f2   :  { %v1323_v24 = vmul.f32 -1.442695, %v2206_v17  ;;  %v2214_v57 = vadd.f32 %v504_v23, %v2184_v3 }
 0x1f3   :  { %1657 = vpow2.f32 %v1322_v20  ;;  %v1324_v62 = vmul.f32 -1.442695, %v2210_v22 }
 0x1f4   :  { %1659 = vpow2.f32 %v1323_v24  ;;  %v1325_v59 = vmul.f32 -1.442695, %v2214_v57 }
 0x1f5   :  { %v1650_v1 = vpop.eup %1649  ;;  %1661 = vpow2.f32 %v1324_v62 }
 0x1f6   :  { %v1652_v25 = vpop.eup %1651  ;;  %v663_v26 = vadd.f32 1.0, %v1650_v1  ;;  %1663 = vpow2.f32 %v1325_v59  ;;  %v508_v27 = vpop.f32.mrb[8].mxu1 }
 0x1f7   :  { %v1654_v28 = vpop.eup %1653  ;;  %v664_v29 = vadd.f32 1.0, %v1652_v25  ;;  %v2219_v31 = vadd.f32 %v508_v27, %v2182_v2  ;;  %v510_v32 = vpop.f32.mrb[9].mxu1 }
 0x1f8   :  { %v1656_v33 = vpop.eup %1655  ;;  %1665 = vrcp.f32 %v663_v26  ;;  %v665_v35 = vadd.f32 1.0, %v1654_v28  ;;  %v2222_v36 = vadd.f32 %v510_v32, %v2184_v3  ;;  %v512_v37 = vpop.f32.mrb[10].mxu1 }
 0x1f9   :  { %1667 = vrcp.f32 %v664_v29  ;;  %v666_v39 = vadd.f32 1.0, %v1656_v33  ;;  %v1326_v10 = vmul.f32 -1.442695, %v2219_v31  ;;  %v2226_v18 = vadd.f32 %v512_v37, %v2182_v2  ;;  %v514_v14 = vpop.f32.mrb[11].mxu1 }
 0x1fa   :  { %1669 = vrcp.f32 %v665_v35  ;;  %v1327_v40 = vmul.f32 -1.442695, %v2222_v36  ;;  %v2230_v21 = vadd.f32 %v514_v14, %v2184_v3 }
 0x1fb   :  { %1671 = vrcp.f32 %v666_v39  ;;  %v1328_v30 = vmul.f32 -1.442695, %v2226_v18 }
 0x1fc   :  { %1673 = vpow2.f32 %v1326_v10  ;;  %v1329_v34 = vmul.f32 -1.442695, %v2230_v21 }
 0x1fd   :  { %v1658_v38 = vpop.eup %1657  ;;  %1675 = vpow2.f32 %v1327_v40 }
 0x1fe   :  { %v1660_v41 = vpop.eup %1659  ;;  %v667_v44 = vadd.f32 1.0, %v1658_v38  ;;  %1677 = vpow2.f32 %v1328_v30  ;;  %v518_v46 = vpop.f32.mrb[12].mxu1 }
 0x1ff   :  { %v1662_v48 = vpop.eup %1661  ;;  %v668_v49 = vadd.f32 1.0, %v1660_v41  ;;  %1679 = vpow2.f32 %v1329_v34  ;;  %v2235_v51 = vadd.f32 %v518_v46, %v2182_v2  ;;  %v520_v42 = vpop.f32.mrb[13].mxu1 }
 0x200   :  { %v1664_v52 = vpop.eup %1663  ;;  %1681 = vrcp.f32 %v667_v44  ;;  %v669_v54 = vadd.f32 1.0, %v1662_v48  ;;  %v2238_v55 = vadd.f32 %v520_v42, %v2184_v3  ;;  %v522_v56 = vpop.f32.mrb[14].mxu1 }
 0x201   :  { %1683 = vrcp.f32 %v668_v49  ;;  %v670_v58 = vadd.f32 1.0, %v1664_v52  ;;  %v1330_v43 = vmul.f32 -1.442695, %v2235_v51  ;;  %v2242_v60 = vadd.f32 %v522_v56, %v2182_v2  ;;  %v524_v61 = vpop.f32.mrb[15].mxu1 }
 0x202   :  { %v1666_v63 = vpop.eup %1665  ;;  %1685 = vrcp.f32 %v669_v54  ;;  %v1331_v0 = vmul.f32 -1.442695, %v2238_v55  ;;  %v2246_v4 = vadd.f32 %v524_v61, %v2184_v3 }
 0x203   :  { %v1668_v45 = vpop.eup %1667  ;;  %1687 = vrcp.f32 %v670_v58  ;;  %v1332_v6 = vmul.f32 -1.442695, %v2242_v60  ;;  %v759_v11 = vmul.f32 %v1666_v63, %v2187_v5 }
 0x204   :  { %v1670_v47 = vpop.eup %1669  ;;  %1689 = vpow2.f32 %v1330_v43  ;;  %v1333_v7 = vmul.f32 -1.442695, %v2246_v4  ;;  %v760_v16 = vmul.f32 %v1668_v45, %v2190_v50 }
 0x205   :  { %v1672_v8 = vpop.eup %1671  ;;  %v761_v12 = vmul.f32 %v1670_v47, %v2194_v53  ;;  %1691 = vpow2.f32 %v1331_v0 }
 0x206   :  { %v1674_v13 = vpop.eup %1673  ;;  %v762_v19 = vmul.f32 %v1672_v8, %v2198_v9  ;;  %1693 = vpow2.f32 %v1332_v6  ;;  %v528_v20 = vpop.f32.mrb[16].mxu1 }
 0x207   :  { %v1676_v23 = vpop.eup %1675  ;;  %v791_v24 = vpack.c.bf16 %v761_v12, %v759_v11  ;;  %v671_v62 = vadd.f32 1.0, %v1674_v13  ;;  %1695 = vpow2.f32 %v1333_v7  ;;  %v2255_v59 = vadd.f32 %v528_v20, %v2182_v2  ;;  %v530_v1 = vpop.f32.mrb[17].mxu1 }
 0x208   :  { %v1678_v25 = vpop.eup %1677  ;;  %v672_v5 = vadd.f32 1.0, %v1676_v23  ;;  %v2258_v53 = vadd.f32 %v530_v1, %v2184_v3  ;;  %v532_v26 = vpop.f32.mrb[18].mxu1  ;;  %v792_v27 = vpack.c.bf16 %v762_v19, %v760_v16 }
 0x209   :  { %v1680_v50 = vpop.eup %1679  ;;  %1697 = vrcp.f32 %v671_v62  ;;  %v673_v9 = vadd.f32 1.0, %v1678_v25  ;;  %v1334_v28 = vmul.f32 -1.442695, %v2255_v59  ;;  %v2262_v29 = vadd.f32 %v532_v26, %v2182_v2  ;;  %v534_v32 = vpop.f32.mrb[19].mxu1 }
 0x20a   :  { %v1682_v33 = vpop.eup %1681  ;;  %1699 = vrcp.f32 %v672_v5  ;;  %v674_v35 = vadd.f32 1.0, %v1680_v50  ;;  %v1335_v37 = vmul.f32 -1.442695, %v2258_v53  ;;  %v2266_v39 = vadd.f32 %v534_v32, %v2184_v3  ;;  %974 = vmatprep.mubr.bf16.mxu0 %v792_v27 }
 0x20b   :  { %v1684_v10 = vpop.eup %1683  ;;  %1701 = vrcp.f32 %v673_v9  ;;  %v1336_v14 = vmul.f32 -1.442695, %v2262_v29  ;;  %975 = vmatmul.mubr.bf16.vlgmr.msra.gmra.mrb[16].mxu0 %v791_v24  ;;  %v763_v38 = vmul.f32 %v1682_v33, %v2203_v15 }
 0x20c   :  { %v1686_v40 = vpop.eup %1685  ;;  %1703 = vrcp.f32 %v674_v35  ;;  %v1337_v30 = vmul.f32 -1.442695, %v2266_v39  ;;  %v764_v46 = vmul.f32 %v1684_v10, %v2206_v17 }
 0x20d   :  { %v1688_v34 = vpop.eup %1687  ;;  %v765_v41 = vmul.f32 %v1686_v40, %v2210_v22  ;;  %1705 = vpow2.f32 %v1334_v28 }
 0x20e   :  { %v1690_v44 = vpop.eup %1689  ;;  %v766_v48 = vmul.f32 %v1688_v34, %v2214_v57  ;;  %1707 = vpow2.f32 %v1335_v37  ;;  %v538_v49 = vpop.f32.mrb[20].mxu1 }
 0x20f   :  { %v1692_v42 = vpop.eup %1691  ;;  %v675_v52 = vadd.f32 1.0, %v1690_v44  ;;  %1709 = vpow2.f32 %v1336_v14  ;;  %v2275_v54 = vadd.f32 %v538_v49, %v2182_v2  ;;  %v540_v56 = vpop.f32.mrb[21].mxu1  ;;  %v793_v58 = vpack.c.bf16 %v765_v41, %v763_v38 }
 0x210   :  { %v1694_v43 = vpop.eup %1693  ;;  %v676_v15 = vadd.f32 1.0, %v1692_v42  ;;  %1711 = vpow2.f32 %v1337_v30  ;;  %v2278_v22 = vadd.f32 %v540_v56, %v2184_v3  ;;  %v542_v61 = vpop.f32.mrb[22].mxu1  ;;  %v794_v17 = vpack.c.bf16 %v766_v48, %v764_v46 }
 0x211   :  { %v1696_v63 = vpop.eup %1695  ;;  %1713 = vrcp.f32 %v675_v52  ;;  %v677_v57 = vadd.f32 1.0, %v1694_v43  ;;  %v1338_v0 = vmul.f32 -1.442695, %v2275_v54  ;;  %v2282_v45 = vadd.f32 %v542_v61, %v2182_v2  ;;  %v544_v6 = vpop.f32.mrb[23].mxu1 }
 0x212   :  { %1715 = vrcp.f32 %v676_v15  ;;  %v678_v47 = vadd.f32 1.0, %v1696_v63  ;;  %v1339_v7 = vmul.f32 -1.442695, %v2278_v22  ;;  %v2286_v8 = vadd.f32 %v544_v6, %v2184_v3  ;;  %982 = vmatprep.mubr.bf16.mxu0 %v794_v17 }
 0x213   :  { %v1698_v11 = vpop.eup %1697  ;;  %1717 = vrcp.f32 %v677_v57  ;;  %v1340_v12 = vmul.f32 -1.442695, %v2282_v45  ;;  %983 = vmatmul.mubr.bf16.gmra.mrb[20].mxu0 %v793_v58 }
 0x214   :  { %v1700_v13 = vpop.eup %1699  ;;  %1719 = vrcp.f32 %v678_v47  ;;  %v1341_v16 = vmul.f32 -1.442695, %v2286_v8  ;;  %v767_v23 = vmul.f32 %v1698_v11, %v2219_v31 }
 0x215   :  { %v1702_v19 = vpop.eup %1701  ;;  %1721 = vpow2.f32 %v1338_v0  ;;  %v768_v25 = vmul.f32 %v1700_v13, %v2222_v36 }
 0x216   :  { %v1704_v20 = vpop.eup %1703  ;;  %v769_v24 = vmul.f32 %v1702_v19, %v2226_v18  ;;  %1723 = vpow2.f32 %v1339_v7  ;;  %v548_v62 = vpop.f32.mrb[24].mxu1 }
 0x217   :  { %v1706_v1 = vpop.eup %1705  ;;  %v770_v5 = vmul.f32 %v1704_v20, %v2230_v21  ;;  %1725 = vpow2.f32 %v1340_v12  ;;  %v2295_v26 = vadd.f32 %v548_v62, %v2182_v2  ;;  %v550_v27 = vpop.f32.mrb[25].mxu1 }
 0x218   :  { %v1708_v50 = vpop.eup %1707  ;;  %v679_v9 = vadd.f32 1.0, %v1706_v1  ;;  %1727 = vpow2.f32 %v1341_v16  ;;  %v2298_v28 = vadd.f32 %v550_v27, %v2184_v3  ;;  %v552_v31 = vpop.f32.mrb[26].mxu1  ;;  %v795_v18 = vpack.c.bf16 %v769_v24, %v767_v23 }
 0x219   :  { %v1710_v32 = vpop.eup %1709  ;;  %v680_v33 = vadd.f32 1.0, %v1708_v50  ;;  %v2301_v35 = vadd.f32 %v552_v31, %v2182_v2  ;;  %v554_v36 = vpop.f32.mrb[27].mxu1  ;;  %v796_v21 = vpack.c.bf16 %v770_v5, %v768_v25  ;;  %v1342_v14 = vmul.f32 -1.442695, %v2295_v26 }
 0x21a   :  { %v1712_v37 = vpop.eup %1711  ;;  %1729 = vrcp.f32 %v679_v9  ;;  %v681_v10 = vadd.f32 1.0, %v1710_v32  ;;  %v2305_v40 = vadd.f32 %v554_v36, %v2184_v3  ;;  %v1343_v38 = vmul.f32 -1.442695, %v2298_v28 }
 0x21b   :  { %v1714_v30 = vpop.eup %1713  ;;  %1731 = vrcp.f32 %v680_v33  ;;  %v682_v34 = vadd.f32 1.0, %v1712_v37  ;;  %990 = vmatprep.mubr.bf16.mxu0 %v796_v21  ;;  %v1344_v44 = vmul.f32 -1.442695, %v2301_v35 }
 0x21c   :  { %v1716_v41 = vpop.eup %1715  ;;  %1733 = vrcp.f32 %v681_v10  ;;  %991 = vmatmul.mubr.bf16.gmra.mrb[24].mxu0 %v795_v18  ;;  %v1345_v48 = vmul.f32 -1.442695, %v2305_v40  ;;  %v771_v42 = vmul.f32 %v1714_v30, %v2235_v51 }
 0x21d   :  { %v1718_v46 = vpop.eup %1717  ;;  %1735 = vrcp.f32 %v682_v34 }
 0x21e   :  { %v1720_v49 = vpop.eup %1719  ;;  %v773_v52 = vmul.f32 %v1718_v46, %v2242_v60  ;;  %1737 = vpow2.f32 %v1342_v14  ;;  %v558_v56 = vpop.f32.mrb[28].mxu1  ;;  %v772_v60 = vmul.f32 %v1716_v41, %v2238_v55 }
 0x21f   :  { %v1722_v58 = vpop.eup %1721  ;;  %v774_v43 = vmul.f32 %v1720_v49, %v2246_v4  ;;  %1739 = vpow2.f32 %v1343_v38  ;;  %v2314_v15 = vadd.f32 %v558_v56, %v2182_v2  ;;  %v560_v61 = vpop.f32.mrb[29].mxu1 }
 0x220   :  { %v1724_v17 = vpop.eup %1723  ;;  %v683_v63 = vadd.f32 1.0, %v1722_v58  ;;  %1741 = vpow2.f32 %v1344_v44  ;;  %v2317_v57 = vadd.f32 %v560_v61, %v2184_v3  ;;  %v562_v0 = vpop.f32.mrb[30].mxu1  ;;  %v797_v51 = vpack.c.bf16 %v773_v52, %v771_v42 }
 0x221   :  { %v1726_v6 = vpop.eup %1725  ;;  %v684_v47 = vadd.f32 1.0, %v1724_v17  ;;  %1743 = vpow2.f32 %v1345_v48  ;;  %v2321_v4 = vadd.f32 %v562_v0, %v2182_v2  ;;  %v564_v7 = vpop.f32.mrb[31].mxu1  ;;  %v1346_v13 = vmul.f32 -1.442695, %v2314_v15 }
 0x222   :  { %v1728_v11 = vpop.eup %1727  ;;  %1745 = vrcp.f32 %v683_v63  ;;  %v685_v12 = vadd.f32 1.0, %v1726_v6  ;;  %v2325_v16 = vadd.f32 %v564_v7, %v2184_v3  ;;  %v1347_v20 = vmul.f32 -1.442695, %v2317_v57 }
 0x223   :  { %1747 = vrcp.f32 %v684_v47  ;;  %v686_v19 = vadd.f32 1.0, %v1728_v11  ;;  %v798_v23 = vpack.c.bf16 %v774_v43, %v772_v60  ;;  %v1348_v24 = vmul.f32 -1.442695, %v2321_v4 }
 0x224   :  { %v1730_v55 = vpop.eup %1729  ;;  %1749 = vrcp.f32 %v685_v12  ;;  %v1349_v62 = vmul.f32 -1.442695, %v2325_v16 }
 0x225   :  { %v1732_v2 = vpop.eup %1731  ;;  %1751 = vrcp.f32 %v686_v19  ;;  %998 = vmatprep.mubr.bf16.mxu0 %v798_v23  ;;  %v775_v3 = vmul.f32 %v1730_v55, %v2255_v59 }
 0x226   :  { %v1734_v1 = vpop.eup %1733  ;;  %1753 = vpow2.f32 %v1346_v13  ;;  %999 = vmatmul.mubr.bf16.gmra.mrb[28].mxu0 %v797_v51  ;;  %v776_v50 = vmul.f32 %v1732_v2, %v2258_v53 }
 0x227   :  { %v1736_v25 = vpop.eup %1735  ;;  %v777_v5 = vmul.f32 %v1734_v1, %v2262_v29  ;;  %1755 = vpow2.f32 %v1347_v20 }
 0x228   :  { %v1738_v27 = vpop.eup %1737  ;;  %v778_v9 = vmul.f32 %v1736_v25, %v2266_v39  ;;  %1757 = vpow2.f32 %v1348_v24 }
 0x229   :  { %v1740_v31 = vpop.eup %1739  ;;  %v687_v18 = vadd.f32 1.0, %v1738_v27  ;;  %1759 = vpow2.f32 %v1349_v62  ;;  %v799_v32 = vpack.c.bf16 %v777_v5, %v775_v3 }
 0x22a   :  { %v1742_v33 = vpop.eup %1741  ;;  %v688_v36 = vadd.f32 1.0, %v1740_v31  ;;  %v800_v21 = vpack.c.bf16 %v778_v9, %v776_v50 }
 0x22b   :  { %v1744_v37 = vpop.eup %1743  ;;  %1761 = vrcp.f32 %v687_v18  ;;  %v689_v10 = vadd.f32 1.0, %v1742_v33 }
 0x22c   :  { %v1746_v59 = vpop.eup %1745  ;;  %1763 = vrcp.f32 %v688_v36  ;;  %v690_v29 = vadd.f32 1.0, %v1744_v37  ;;  %1006 = vmatprep.mubr.bf16.mxu0 %v800_v21 }
 0x22d   :  { %v1748_v14 = vpop.eup %1747  ;;  %1765 = vrcp.f32 %v689_v10  ;;  %v779_v30 = vmul.f32 %v1746_v59, %v2275_v54 }
 0x22e   :  { %v1750_v53 = vpop.eup %1749  ;;  %1767 = vrcp.f32 %v690_v29  ;;  %1007 = vmatmul.mubr.bf16.gmra.mrb[32].mxu0 %v799_v32  ;;  %v780_v41 = vmul.f32 %v1748_v14, %v2278_v22 }
 0x22f   :  { %v1752_v39 = vpop.eup %1751  ;;  %v781_v34 = vmul.f32 %v1750_v53, %v2282_v45 }
 0x230   :  { %v1754_v38 = vpop.eup %1753  ;;  %v782_v44 = vmul.f32 %v1752_v39, %v2286_v8 }
 0x231   :  { %v1756_v46 = vpop.eup %1755  ;;  %v691_v48 = vadd.f32 1.0, %v1754_v38  ;;  %v801_v49 = vpack.c.bf16 %v781_v34, %v779_v30 }
 0x232   :  { %v1758_v42 = vpop.eup %1757  ;;  %v692_v52 = vadd.f32 1.0, %v1756_v46  ;;  %v802_v56 = vpack.c.bf16 %v782_v44, %v780_v41 }
 0x233   :  { %v1760_v58 = vpop.eup %1759  ;;  %1769 = vrcp.f32 %v691_v48  ;;  %v693_v43 = vadd.f32 1.0, %v1758_v42 }
 0x234   :  { %1771 = vrcp.f32 %v692_v52  ;;  %v694_v61 = vadd.f32 1.0, %v1760_v58  ;;  %1014 = vmatprep.mubr.bf16.mxu0 %v802_v56 }
 0x235   :  { %v1762_v54 = vpop.eup %1761  ;;  %1773 = vrcp.f32 %v693_v43 }
 0x236   :  { %v1764_v45 = vpop.eup %1763  ;;  %1775 = vrcp.f32 %v694_v61  ;;  %1015 = vmatmul.mubr.bf16.gmra.mrb[36].mxu0 %v801_v49  ;;  %v783_v8 = vmul.f32 %v1762_v54, %v2295_v26 }
 0x237   :  { %v1766_v22 = vpop.eup %1765  ;;  %v784_v0 = vmul.f32 %v1764_v45, %v2298_v28 }
 0x238   :  { %v1768_v17 = vpop.eup %1767  ;;  %v785_v63 = vmul.f32 %v1766_v22, %v2301_v35 }
 0x239   :  { %v786_v51 = vmul.f32 %v1768_v17, %v2305_v40  ;;  %v1895_v40 = vmov 0.0  }
 0x23a   :  { %v803_v6 = vpack.c.bf16 %v785_v63, %v783_v8  ;;  %1495 = vmatprep.subr.bf16.mxu1 %v1895_v40  ;;  %1515 = vmatprep.subr.bf16.mxu0 %v1895_v40 }
 0x23b   :  { %v804_v60 = vpack.c.bf16 %v786_v51, %v784_v0  ;;  %1511 = vmatprep.mubr.msk.bf16.mxu1 %vm1896_vm1, %v1895_v40 }
 0x23d   :  { %v1770_v47 = vpop.eup %1769  ;;  %1022 = vmatprep.mubr.bf16.mxu0 %v804_v60 }
 0x23e   :  { %v1772_v7 = vpop.eup %1771  ;;  %1023 = vmatmul.mubr.bf16.gmra.mrb[40].mxu0 %v803_v6  ;;  %v787_v13 = vmul.f32 %v1770_v47, %v2314_v15  ;;  %v1160_v15 = vld [vmem:[%s2469_s9] sm:$0xf] }
 0x23f   :  { %v1774_v11 = vpop.eup %1773  ;;  %v788_v26 = vmul.f32 %v1772_v7, %v2317_v57  ;;  %1163 = vperm.xlu0 %1542, %v1160_v15   ;;  %v1207_v57 = vld [vmem:[%s2471_s11] sm:$0xf] }
 0x240   :  { %v1776_v12 = vpop.eup %1775  ;;  %v789_v19 = vmul.f32 %v1774_v11, %v2321_v4 }
 0x241   :  { %v790_v35 = vmul.f32 %v1776_v12, %v2325_v16  ;;  %v2359_v16 = vld [vmem:[%s2467_s7] ss:$0 sm:$0xff] }
 0x242   :  { %v805_v20 = vpack.c.bf16 %v789_v19, %v787_v13 }
 0x243   :  { %v806_v28 = vpack.c.bf16 %v790_v35, %v788_v26  ;;  %1210 = vperm.xlu0 %1542, %v1207_v57  }
 0x245   :  { %1030 = vmatprep.mubr.bf16.mxu0 %v806_v28 }
 0x246   :  { %1031 = vmatmul.mubr.bf16.gmra.mrb[44].mxu0 %v805_v20 }
 0x247   :  { %1531 = vmatprep.mubr.msk.bf16.mxu0 %vm1896_vm1, %v1895_v40 }
 0x2de   :  { %v1409_v4 = vpop.f32.mrb[16].mxu0 }
 0x2df   :  { %v1410_v23 = vpop.f32.mrb[17].mxu0 }
 0x2e0   :  { %v1411_v55 = vadd.f32 %v1410_v23, %v1409_v4  ;;  %v1412_v24 = vpop.f32.mrb[18].mxu0 }
 0x2e1   :  { %v1413_v2 = vpop.f32.mrb[19].mxu0 }
 0x2e2   :  { %v977_v62 = vadd.f32 %v1411_v55, %v2359_v16  ;;  %v1414_v1 = vadd.f32 %v1413_v2, %v1412_v24 }
 0x2e4   :  { %v1367_v25 = vmul.f32 -1.442695, %v977_v62  ;;  %v980_v3 = vadd.f32 %v1414_v1, %v2359_v16 }
 0x2e6   :  { %1777 = vpow2.f32 %v1367_v25  ;;  %v1368_v5 = vmul.f32 -1.442695, %v980_v3  ;;  %v1415_v27 = vpop.f32.mrb[20].mxu0 }
 0x2e7   :  { %v1416_v50 = vpop.f32.mrb[21].mxu0 }
 0x2e8   :  { %1779 = vpow2.f32 %v1368_v5  ;;  %v1417_v9 = vadd.f32 %v1416_v50, %v1415_v27  ;;  %v1418_v31 = vpop.f32.mrb[22].mxu0 }
 0x2e9   :  { %v1419_v18 = vpop.f32.mrb[23].mxu0 }
 0x2ea   :  { %v2364_v32 = vadd.f32 %v1417_v9, %v2359_v16  ;;  %v1420_v33 = vadd.f32 %v1419_v18, %v1418_v31 }
 0x2ec   :  { %v1369_v36 = vmul.f32 -1.442695, %v2364_v32  ;;  %v2368_v21 = vadd.f32 %v1420_v33, %v2359_v16 }
 0x2ee   :  { %1781 = vpow2.f32 %v1369_v36  ;;  %v1370_v37 = vmul.f32 -1.442695, %v2368_v21 }
 0x2ef   :  { %v1421_v10 = vpop.f32.mrb[24].mxu0 }
 0x2f0   :  { %v1778_v59 = vpop.eup %1777  ;;  %1783 = vpow2.f32 %v1370_v37  ;;  %v1422_v29 = vpop.f32.mrb[25].mxu0 }
 0x2f1   :  { %v1087_v14 = vadd.f32 1.0, %v1778_v59  ;;  %v1423_v53 = vadd.f32 %v1422_v29, %v1421_v10  ;;  %v1424_v39 = vpop.f32.mrb[26].mxu0 }
 0x2f2   :  { %v1780_v30 = vpop.eup %1779  ;;  %v1425_v34 = vpop.f32.mrb[27].mxu0 }
 0x2f3   :  { %1785 = vrcp.f32 %v1087_v14  ;;  %v1088_v38 = vadd.f32 1.0, %v1780_v30  ;;  %v2372_v41 = vadd.f32 %v1423_v53, %v2359_v16  ;;  %v1426_v44 = vadd.f32 %v1425_v34, %v1424_v39 }
 0x2f5   :  { %1787 = vrcp.f32 %v1088_v38  ;;  %v1371_v46 = vmul.f32 -1.442695, %v2372_v41  ;;  %v2376_v48 = vadd.f32 %v1426_v44, %v2359_v16 }
 0x2f7   :  { %1789 = vpow2.f32 %v1371_v46  ;;  %v1372_v49 = vmul.f32 -1.442695, %v2376_v48 }
 0x2f8   :  { %v1782_v42 = vpop.eup %1781 }
 0x2f9   :  { %v1089_v52 = vadd.f32 1.0, %v1782_v42  ;;  %1791 = vpow2.f32 %v1372_v49  ;;  %v1427_v56 = vpop.f32.mrb[28].mxu0 }
 0x2fa   :  { %v1784_v58 = vpop.eup %1783  ;;  %v1428_v43 = vpop.f32.mrb[29].mxu0 }
 0x2fb   :  { %1793 = vrcp.f32 %v1089_v52  ;;  %v1090_v61 = vadd.f32 1.0, %v1784_v58  ;;  %v1429_v54 = vadd.f32 %v1428_v43, %v1427_v56  ;;  %v1430_v45 = vpop.f32.mrb[30].mxu0 }
 0x2fc   :  { %v1431_v22 = vpop.f32.mrb[31].mxu0 }
 0x2fd   :  { %v1786_v17 = vpop.eup %1785  ;;  %1795 = vrcp.f32 %v1090_v61  ;;  %v2380_v8 = vadd.f32 %v1429_v54, %v2359_v16  ;;  %v1432_v63 = vadd.f32 %v1431_v22, %v1430_v45 }
 0x2fe   :  { %v1135_v60 = vmul.f32 %v1786_v17, %v977_v62 }
 0x2ff   :  { %v1788_v0 = vpop.eup %1787  ;;  %v1373_v51 = vmul.f32 -1.442695, %v2380_v8  ;;  %v2384_v6 = vadd.f32 %v1432_v63, %v2359_v16 }
 0x300   :  { %v1136_v47 = vmul.f32 %v1788_v0, %v980_v3 }
 0x301   :  { %v1790_v7 = vpop.eup %1789  ;;  %1797 = vpow2.f32 %v1373_v51  ;;  %v1374_v11 = vmul.f32 -1.442695, %v2384_v6  ;;  %v1433_v12 = vpop.f32.mrb[32].mxu0 }
 0x302   :  { %v1151_v13 = vpack.c.bf16 %v1136_v47, %v1135_v60  ;;  %v1091_v19 = vadd.f32 1.0, %v1790_v7  ;;  %v1434_v26 = vpop.f32.mrb[33].mxu0 }
 0x303   :  { %v1792_v35 = vpop.eup %1791  ;;  %1799 = vpow2.f32 %v1374_v11  ;;  %v1435_v20 = vadd.f32 %v1434_v26, %v1433_v12  ;;  %v1436_v28 = vpop.f32.mrb[34].mxu0 }
 0x304   :  { %1801 = vrcp.f32 %v1091_v19  ;;  %v1092_v15 = vadd.f32 1.0, %v1792_v35  ;;  %v1437_v57 = vpop.f32.mrb[35].mxu0  ;;  %1496 = vmatpush3.bf16.xpose.msra.mxu1 %v1151_v13  ;;  %1516 = vmatpush3.bf16.xpose.msra.mxu0 %v1151_v13 }
 0x305   :  { %v1794_v4 = vpop.eup %1793  ;;  %v2388_v23 = vadd.f32 %v1435_v20, %v2359_v16  ;;  %v1438_v55 = vadd.f32 %v1437_v57, %v1436_v28  ;;  %1497 = vmatprep.subr.bf16.mxu1 %v1895_v40  ;;  %1517 = vmatprep.subr.bf16.mxu0 %v1895_v40 }
 0x306   :  { %1803 = vrcp.f32 %v1092_v15  ;;  %v1137_v1 = vmul.f32 %v1794_v4, %v2364_v32 }
 0x307   :  { %v1796_v24 = vpop.eup %1795  ;;  %v1375_v2 = vmul.f32 -1.442695, %v2388_v23  ;;  %v2394_v62 = vadd.f32 %v1438_v55, %v2359_v16 }
 0x308   :  { %v1138_v25 = vmul.f32 %v1796_v24, %v2368_v21 }
 0x309   :  { %1805 = vpow2.f32 %v1375_v2  ;;  %v1376_v3 = vmul.f32 -1.442695, %v2394_v62  ;;  %v1439_v5 = vpop.f32.mrb[36].mxu0 }
 0x30a   :  { %v1152_v27 = vpack.c.bf16 %v1138_v25, %v1137_v1  ;;  %v1440_v50 = vpop.f32.mrb[37].mxu0 }
 0x30b   :  { %v1798_v9 = vpop.eup %1797  ;;  %1807 = vpow2.f32 %v1376_v3  ;;  %v1441_v31 = vadd.f32 %v1440_v50, %v1439_v5  ;;  %v1442_v18 = vpop.f32.mrb[38].mxu0 }
 0x30c   :  { %v1093_v33 = vadd.f32 1.0, %v1798_v9  ;;  %v1443_v36 = vpop.f32.mrb[39].mxu0  ;;  %1498 = vmatpush3.bf16.xpose.msra.mxu1 %v1152_v27  ;;  %1518 = vmatpush3.bf16.xpose.msra.mxu0 %v1152_v27 }
 0x30d   :  { %v1800_v37 = vpop.eup %1799  ;;  %v2400_v10 = vadd.f32 %v1441_v31, %v2359_v16  ;;  %v1444_v32 = vadd.f32 %v1443_v36, %v1442_v18  ;;  %1499 = vmatprep.subr.bf16.mxu1 %v1895_v40  ;;  %1519 = vmatprep.subr.bf16.mxu0 %v1895_v40 }
 0x30e   :  { %v1802_v21 = vpop.eup %1801  ;;  %1809 = vrcp.f32 %v1093_v33  ;;  %v1094_v59 = vadd.f32 1.0, %v1800_v37 }
 0x30f   :  { %v1377_v29 = vmul.f32 -1.442695, %v2400_v10  ;;  %v2406_v14 = vadd.f32 %v1444_v32, %v2359_v16  ;;  %v1139_v39 = vmul.f32 %v1802_v21, %v2372_v41 }
 0x310   :  { %v1804_v53 = vpop.eup %1803  ;;  %1811 = vrcp.f32 %v1094_v59 }
 0x311   :  { %v1140_v30 = vmul.f32 %v1804_v53, %v2376_v48  ;;  %1813 = vpow2.f32 %v1377_v29  ;;  %v1378_v34 = vmul.f32 -1.442695, %v2406_v14  ;;  %v1445_v38 = vpop.f32.mrb[40].mxu0 }
 0x312   :  { %v1446_v44 = vpop.f32.mrb[41].mxu0 }
 0x313   :  { %v1806_v46 = vpop.eup %1805  ;;  %v1153_v49 = vpack.c.bf16 %v1140_v30, %v1139_v39  ;;  %1815 = vpow2.f32 %v1378_v34  ;;  %v1447_v42 = vadd.f32 %v1446_v44, %v1445_v38  ;;  %v1448_v52 = vpop.f32.mrb[42].mxu0  ;;  %v1159_v34 = vld [vmem:[%s2468_s8] sm:$0x3] }
 0x314   :  { %v1095_v56 = vadd.f32 1.0, %v1806_v46  ;;  %v1449_v58 = vpop.f32.mrb[43].mxu0  ;;  %v1206_v38 = vld [vmem:[%s2470_s10] sm:$0x3]  ;;  %v1164_v44 = vpop.permute.xlu0 %1163  ;;  %s1897_s10 = smov [#allocation5]  }
 0x315   :  { %v1808_v43 = vpop.eup %1807  ;;  %v2412_v61 = vadd.f32 %v1447_v42, %v2359_v16  ;;  %v1450_v54 = vadd.f32 %v1449_v58, %v1448_v52  ;;  %1500 = vmatpush3.bf16.xpose.msra.mxu1 %v1153_v49  ;;  %1520 = vmatpush3.bf16.xpose.msra.mxu0 %v1153_v49  ;;  %s1266_s30 = sshll.u32 %s1897_s10, 4  ;;  %s1267_s30 = int_to_ptr.vmem [resolvable:$true] %s1266_s30 }
 0x316   :  { %1817 = vrcp.f32 %v1095_v56  ;;  %v1096_v41 = vadd.f32 1.0, %v1808_v43  ;;  %1501 = vmatprep.subr.bf16.mxu1 %v1895_v40  ;;  %1521 = vmatprep.subr.bf16.mxu0 %v1895_v40  ;;  %s1865_s13 = scalar_lea.vmem %s1267_s30, 64  ;;  %p1870_p9 = scmp.lt.s32.totalorder %s1267_s30, %s1267_s30 }
 0x317   :  { %v1379_v48 = vmul.f32 -1.442695, %v2412_v61  ;;  %v2418_v45 = vadd.f32 %v1450_v54, %v2359_v16  ;;  %p1866_p8 = scmp.ne.s32.totalorder %s1267_s30, %s1865_s13  ;;  %p1871_p10 = scmp.lt.s32.totalorder %s1865_s13, %s1865_s13 }
 0x318   :  { %v1810_v22 = vpop.eup %1809  ;;  %1819 = vrcp.f32 %v1096_v41 }
 0x319   :  { %1821 = vpow2.f32 %v1379_v48  ;;  %v1380_v17 = vmul.f32 -1.442695, %v2418_v45  ;;  %v1451_v63 = vpop.f32.mrb[44].mxu0  ;;  %v1141_v47 = vmul.f32 %v1810_v22, %v2380_v8  ;;  %v1211_v48 = vpop.permute.xlu0 %1210  ;;  %p1872_p11 = por %p1871_p10, %p1870_p9 }
 0x31a   :  { %v1812_v0 = vpop.eup %1811  ;;  %v1452_v51 = vpop.f32.mrb[45].mxu0 }
 0x31b   :  { %v1814_v60 = vpop.eup %1813  ;;  %v1142_v7 = vmul.f32 %v1812_v0, %v2384_v6  ;;  %1823 = vpow2.f32 %v1380_v17  ;;  %v1453_v11 = vadd.f32 %v1452_v51, %v1451_v63  ;;  %v1454_v12 = vpop.f32.mrb[46].mxu0  ;;  %p1873_p12 = pnand %p1872_p11, %p1866_p8 }
 0x31c   :  { %v1097_v13 = vadd.f32 1.0, %v1814_v60  ;;  %v1455_v19 = vpop.f32.mrb[47].mxu0 }
 0x31d   :  { %v1816_v26 = vpop.eup %1815  ;;  %v1154_v35 = vpack.c.bf16 %v1142_v7, %v1141_v47  ;;  %v1033_v20 = vadd.f32 %v1453_v11, %v2359_v16  ;;  %v1456_v28 = vadd.f32 %v1455_v19, %v1454_v12 }
 0x31e   :  { %1825 = vrcp.f32 %v1097_v13  ;;  %v1098_v15 = vadd.f32 1.0, %v1816_v26 }
 0x31f   :  { %v1381_v57 = vmul.f32 -1.442695, %v1033_v20  ;;  %v1036_v4 = vadd.f32 %v1456_v28, %v2359_v16  ;;  %1502 = vmatpush3.bf16.xpose.msra.mxu1 %v1154_v35  ;;  %1522 = vmatpush3.bf16.xpose.msra.mxu0 %v1154_v35 }
 0x320   :  { %v1818_v8 = vpop.eup %1817  ;;  %1827 = vrcp.f32 %v1098_v15  ;;  %1503 = vmatprep.subr.bf16.mxu1 %v1895_v40  ;;  %1523 = vmatprep.subr.bf16.mxu0 %v1895_v40 }
 0x321   :  { %1829 = vpow2.f32 %v1381_v57  ;;  %v1382_v6 = vmul.f32 -1.442695, %v1036_v4  ;;  %v1143_v2 = vmul.f32 %v1818_v8, %v2388_v23 }
 0x322   :  { %v1820_v55 = vpop.eup %1819 }
 0x323   :  { %v1822_v24 = vpop.eup %1821  ;;  %v1144_v1 = vmul.f32 %v1820_v55, %v2394_v62  ;;  %1831 = vpow2.f32 %v1382_v6 }
 0x324   :  { %v1099_v25 = vadd.f32 1.0, %v1822_v24 }
 0x325   :  { %v1824_v3 = vpop.eup %1823  ;;  %v1155_v16 = vpack.c.bf16 %v1144_v1, %v1143_v2 }
 0x326   :  { %1833 = vrcp.f32 %v1099_v25  ;;  %v1100_v5 = vadd.f32 1.0, %v1824_v3 }
 0x327   :  { %1504 = vmatpush3.bf16.xpose.msra.mxu1 %v1155_v16  ;;  %1524 = vmatpush3.bf16.xpose.msra.mxu0 %v1155_v16 }
 0x328   :  { %v1826_v27 = vpop.eup %1825  ;;  %1835 = vrcp.f32 %v1100_v5  ;;  %1505 = vmatprep.subr.bf16.mxu1 %v1895_v40  ;;  %1525 = vmatprep.subr.bf16.mxu0 %v1895_v40 }
 0x329   :  { %v1145_v23 = vmul.f32 %v1826_v27, %v2400_v10 }
 0x32a   :  { %v1828_v50 = vpop.eup %1827 }
 0x32b   :  { %v1830_v9 = vpop.eup %1829  ;;  %v1146_v62 = vmul.f32 %v1828_v50, %v2406_v14 }
 0x32c   :  { %v1101_v31 = vadd.f32 1.0, %v1830_v9 }
 0x32d   :  { %v1832_v18 = vpop.eup %1831  ;;  %v1156_v33 = vpack.c.bf16 %v1146_v62, %v1145_v23 }
 0x32e   :  { %1837 = vrcp.f32 %v1101_v31  ;;  %v1102_v36 = vadd.f32 1.0, %v1832_v18 }
 0x32f   :  { %1506 = vmatpush3.bf16.xpose.msra.mxu1 %v1156_v33  ;;  %1526 = vmatpush3.bf16.xpose.msra.mxu0 %v1156_v33 }
 0x330   :  { %v1834_v37 = vpop.eup %1833  ;;  %1839 = vrcp.f32 %v1102_v36  ;;  %1507 = vmatprep.subr.bf16.mxu1 %v1895_v40  ;;  %1527 = vmatprep.subr.bf16.mxu0 %v1895_v40 }
 0x331   :  { %v1147_v21 = vmul.f32 %v1834_v37, %v2412_v61 }
 0x332   :  { %v1836_v32 = vpop.eup %1835 }
 0x333   :  { %v1148_v10 = vmul.f32 %v1836_v32, %v2418_v45  ;;  %v1253_v45 = vld [vmem:[%s2461_s1] sm:$0xf] }
 0x335   :  { %v1157_v59 = vpack.c.bf16 %v1148_v10, %v1147_v21 }
 0x337   :  { %1508 = vmatpush3.bf16.xpose.msra.mxu1 %v1157_v59  ;;  %1528 = vmatpush3.bf16.xpose.msra.mxu0 %v1157_v59 }
 0x338   :  { %v1838_v29 = vpop.eup %1837  ;;  %1509 = vmatprep.subr.bf16.mxu1 %v1895_v40  ;;  %1529 = vmatprep.subr.bf16.mxu0 %v1895_v40 }
 0x339   :  { %v1149_v53 = vmul.f32 %v1838_v29, %v1033_v20 }
 0x33a   :  { %v1840_v14 = vpop.eup %1839 }
 0x33b   :  { %v1150_v39 = vmul.f32 %v1840_v14, %v1036_v4 }
 0x33d   :  { %v1158_v30 = vpack.c.bf16 %v1150_v39, %v1149_v53 }
 0x33f   :  { %1510 = vmatpush3.bf16.xpose.msra.mxu1 %v1158_v30  ;;  %1530 = vmatpush3.bf16.xpose.msra.mxu0 %v1158_v30 }
 0x346   :  { %1512 = vmatmul.mubr.bf16.vlgmr.msra.gmra.mrb[32].mxu1 %v1159_v34  ;;  %1532 = vmatmul.mubr.bf16.vlgmr.msra.gmra.mrb[48].mxu0 %v1206_v38 }
 0x419   :  { %v1200_v46 = vpop.f32.mrb[32].mxu1  ;;  %v1247_v49 = vpop.f32.mrb[48].mxu0 }
 0x41a   :  { %v1201_v40 = vadd.f32 %v1200_v46, %v1164_v44  ;;  %v1513_v42 = vpop.f32.mrb[33].mxu1  ;;  %v1533_v52 = vpop.f32.mrb[49].mxu0  ;;  %v1248_v17 = vadd.f32 %v1247_v49, %v1211_v48 }
 0x41b   :  { %v1203_v56 = vpop.f32.mrb[34].mxu1  ;;  %v1250_v58 = vpop.f32.mrb[50].mxu0 }
 0x41c   :  { %v1254_v43 = vmin.f32 %v1201_v40, 3.0  ;;  %v1514_v61 = vpop.f32.mrb[35].mxu1  ;;  %v1534_v54 = vpop.f32.mrb[51].mxu0 }
 0x41e   :  { %v1255_v41 = vmul.f32 1.442695, %v1254_v43 }
 0x420   :  { %1841 = vpow2.f32 %v1255_v41 }
 0x42a   :  { %v1842_v22 = vpop.eup %1841 }
 0x42b   :  { %v1257_v63 = vmul.f32 %v1842_v22, %v1253_v45 }
 0x42d   :  { %v1258_v0 = vadd.f32 %v1257_v63, %v1248_v17 }
 0x42f   :  { %1259 = vst [vmem:[#allocation5] sm:$0xf] %v1258_v0 }
 0x430   :  { %1876 = shalt.err (!%p1873_p12)
}
 0x431   :  { %s1877_s16 = scalar_lea.hbm %s2472_s12, 64 }
 0x432   :  { %p1878_p13 = scmp.ne.s32.totalorder %s2472_s12, %s1877_s16  ;;  %p1881_p0 = scmp.lt.u32.totalorder %s1877_s16, %s2472_s12 }
 0x434   :  { %p1883_p1 = pnand %p1881_p0, %p1878_p13 }
 0x436   :  { %1886 = shalt.err (!%p1883_p1)
}
 0x437   :  { %1269 = dma.vmem_to_hbm [thread:$0]  %s1267_s30, 64, %s2472_s12, [#allocation4]  }
 0x438   :  { %1889 = dma.done.wait [#allocation4], 64  }
 0x439   :  { %1890 = vsyncadd [#allocation4], 4294967232 }
 0x43a   :  { %1273 = vsyncpa [#allocation3], 1 }
 0x43b   :  { %1274 = vsyncpa [#allocation4], 1 }

</bundles_post_ra>
